<compile_context>
chip_gen: v7x
topology: tpu7x:2x2x1
jax: 0.10.0
libtpu: 0.0.40
codegen_flags: <defaults>
</compile_context>

<pallas_src>
import functools

import jax
import jax.numpy as jnp
from jax import lax
from jax.experimental import pallas as pl
from jax.experimental.pallas import tpu as pltpu


# ----------------------------------------------------------------------------
# small math helpers (used inside the kernel)
# ----------------------------------------------------------------------------
def _softmax(x, axis=-1, exact=False):
    m = jnp.max(x, axis=axis, keepdims=True)
    e = jnp.exp(x - m)
    s = jnp.sum(e, axis=axis, keepdims=True)
    if exact:
        return e / s
    return e * pl.reciprocal(s, approx=True)


def _softplus(x):
    # numerically stable softplus: max(x, 0) + log1p(exp(-|x|))
    return jnp.maximum(x, 0.0) + jnp.log1p(jnp.exp(-jnp.abs(x)))


def _rowwise_topk_rank(noisy, max_temp_elems=1 << 19):
    """rank[b, j] = #{ l : noisy[b,l] > noisy[b,j]
                          or (noisy[b,l] == noisy[b,j] and l < j) }
    Stable lower-index-first tie-break, like torch.topk.  Chunked along the
    scored axis so the (tB, E, Ej) temporary stays a few MiB even for large E
    (avoids vreg spills / VMEM pressure in the epilogue)."""
    tb, E = noisy.shape
    ej = max(1, min(E, max_temp_elems // max(1, tb * E)))
    a = noisy[:, :, None]                                        # (tb, E, 1)
    l_ids = lax.broadcasted_iota(jnp.int32, (tb, E, 1), 1)
    chunks = []
    for j0 in range(0, E, ej):
        j1 = min(E, j0 + ej)
        bb = noisy[:, None, j0:j1]                               # (tb, 1, cj)
        j_ids = j0 + lax.broadcasted_iota(jnp.int32, (tb, 1, j1 - j0), 2)
        beats = (a > bb) | ((a == bb) & (l_ids < j_ids))         # (tb, E, cj)
        chunks.append(jnp.sum(beats.astype(jnp.int32), axis=1))  # (tb, cj)
    return chunks[0] if len(chunks) == 1 else jnp.concatenate(chunks, axis=-1)


# ----------------------------------------------------------------------------
# kernel
# ----------------------------------------------------------------------------
def noisy_topk_router_kernel(x_ref, w_ref, b_ref, gauss_ref, k_ref,
                             router_ref, noisy_ref, acc_ref,
                             *, inv_s, num_experts, accum_chunk):
    s = pl.program_id(1)

    @pl.when(s == 0)
    def _():
        acc_ref[...] = jnp.zeros_like(acc_ref)

    # --- streaming pooled-sum accumulation ----------------------------------
    # Chunked so a bf16 block never produces a full-block f32 temporary: each
    # slice is loaded, upcast, reduced and added into the resident accumulator.
    tS = x_ref.shape[1]
    n_chunks = tS // accum_chunk
    if n_chunks <= 1:
        acc_ref[...] += jnp.sum(x_ref[...].astype(jnp.float32), axis=1)
    else:
        def body(c, carry):
            off = pl.multiple_of(c * accum_chunk, accum_chunk)
            xc = x_ref[:, pl.ds(off, accum_chunk), :].astype(jnp.float32)
            acc_ref[...] += jnp.sum(xc, axis=1)
            return carry
        lax.fori_loop(0, n_chunks, body, 0, unroll=n_chunks <= 8)

    # --- epilogue: runs once per B tile, hidden under the pipeline ----------
    @pl.when(s == pl.num_programs(1) - 1)
    def _():
        E = num_experts
        pooled = acc_ref[...] * inv_s                      # mean over dims (1, 2)

        # Fused route + noise projection: single MXU pass over (D, 2E).
        z = jnp.dot(pooled, w_ref[...], preferred_element_type=jnp.float32)
        z = z + b_ref[...]
        logits = _softmax(z[:, :E])
        noise = _softmax(gauss_ref[...] * _softplus(z[:, E:]))
        noisy = logits + noise                             # (tB, E)
        noisy_ref[...] = noisy

        # Per-row variable top-k (k = mis_mask[b]) as a rank computation.
        rank = _rowwise_topk_rank(noisy)                   # (tB, E)
        keep = rank < k_ref[...]                           # (tB, E)
        # Non-selected experts stay 0.0 (scatter into torch.zeros_like).
        sparse = jnp.where(keep, noisy, jnp.zeros_like(noisy))
        # Exact normalization for the final router output (consumers may rely
        # on rows summing to exactly 1); approx reciprocal stays elsewhere.
        router_ref[...] = _softmax(sparse, exact=True)


# ----------------------------------------------------------------------------
# generation-aware tiling heuristics
# ----------------------------------------------------------------------------
def _chip_profile():
    """Best-effort query of the local TPU generation for tile/VMEM heuristics."""
    kind = ""
    try:
        kind = jax.devices()[0].device_kind.lower()
    except Exception:
        pass
    vmem_bytes = None
    try:
        vmem_bytes = int(pltpu.get_tpu_info().vmem_capacity_bytes)
    except Exception:
        vmem_bytes = None

    is_v7 = "v7" in kind
    is_v5e = ("v5e" in kind) or ("v5 lite" in kind) or ("v5litepod" in kind)
    if vmem_bytes is None:
        vmem_bytes = (64 << 20) if is_v7 else (128 << 20)

    if is_v7:
        target_bytes = 16 << 20    # ~5 us of DMA @ 3.2 TB/s; amortizes 0.35 us/step
        tc_per_chip = 2            # shard B tiles across both TensorCores
    elif is_v5e:
        target_bytes = 8 << 20     # already <4% per-step overhead @ 0.82 TB/s
        tc_per_chip = 1
    else:                          # v6e and unknown generations
        target_bytes = 16 << 20
        tc_per_chip = 1
    # Leave headroom below physical/scoped VMEM for the compiler.
    vmem_cap = min(100 << 20, max(16 << 20, vmem_bytes - (8 << 20)))
    return target_bytes, vmem_cap, tc_per_chip


def _sublane_rows(dtype):
    # f32 -> 8, bf16 -> 16, int8/fp8 -> 32 (packed dtypes tile sublanes in
    # pairs/quads; keep tS a multiple of the packed tile).
    return max(8, 32 // jnp.dtype(dtype).itemsize)


def _pick_block_b(B, tc_per_chip=1):
    candidates = (256, 128, 64, 32, 16, 8)
    if tc_per_chip > 1 and B >= 16:
        # Guarantee >= 2 B tiles so the "parallel" axis actually splits across
        # both TensorCores on v7x.
        cap = (B // 2 // 8) * 8
        for tb in candidates:
            if tb <= cap and B % tb == 0:
                return tb
    if B <= 8:
        return B                   # full dim satisfies the (8,128) rule
    for tb in candidates:
        if B % tb == 0:
            return tb
    return B


def _pick_block_s(S, tB, D, dtype, target_bytes):
    # Largest tS that (a) keeps one input block near target_bytes so double-
    # buffering fits comfortably, (b) divides S exactly, (c) is a multiple of
    # the dtype's sublane tile (or == S).
    itemsize = jnp.dtype(dtype).itemsize
    sub = _sublane_rows(dtype)
    max_rows = max(sub, target_bytes // max(1, tB * D * itemsize))
    if S <= max_rows:
        return S
    ts = (max_rows // sub) * sub
    while ts > sub and S % ts != 0:
        ts -= sub
    if S % ts != 0:
        # TODO(synk): handle ragged S (not a multiple of the sublane tile) with
        # a masked tail block instead of falling back to the full dimension.
        return S
    return ts


def _pick_accum_chunk(tS, sub, max_chunk=512):
    """Rows reduced per in-kernel accumulate slice (must divide tS)."""
    if tS <= max_chunk:
        return tS
    c = (max_chunk // sub) * sub
    while c > sub and tS % c != 0:
        c -= sub
    return c if tS % c == 0 else tS


def _single_buffered_spec(block_shape, index_map):
    """Grid-invariant operand: one VMEM buffer is enough (constant index_map),
    reclaiming the second copy's VMEM for the larger x double-buffer."""
    try:
        return pl.BlockSpec(block_shape, index_map, pipeline_mode=pl.Buffered(1))
    except TypeError:   # older jax without pipeline_mode
        return pl.BlockSpec(block_shape, index_map)


# ----------------------------------------------------------------------------
# host-side wrapper
# ----------------------------------------------------------------------------
def init_params(key, n_embed, num_experts):
    """Deterministic nn.Linear-style init (uniform +/- 1/sqrt(fan_in)).
    Weights stored transposed, (D, E), so the kernel computes pooled @ W."""
    k1, k2, k3, k4 = jax.random.split(key, 4)
    bound = 1.0 / (n_embed ** 0.5)
    return {
        "w_route": jax.random.uniform(k1, (n_embed, num_experts), jnp.float32,
                                      -bound, bound),
        "b_route": jax.random.uniform(k2, (1, num_experts), jnp.float32,
                                      -bound, bound),
        "w_noise": jax.random.uniform(k3, (n_embed, num_experts), jnp.float32,
                                      -bound, bound),
        "b_noise": jax.random.uniform(k4, (1, num_experts), jnp.float32,
                                      -bound, bound),
    }


def noisy_topk_router(mh_output, mis_mask, params, noise_key,
                      block_s=None, accum_chunk=None):
    B, S1, S2, D = mh_output.shape
    E = params["w_route"].shape[1]
    S = S1 * S2

    # Keep the input in its NATIVE dtype on the wire (bf16 stays bf16);
    # the kernel upcasts to f32 chunk-by-chunk before accumulating.
    x = mh_output.reshape(B, S, D)
    gauss = jax.random.normal(noise_key, (B, E), dtype=jnp.float32)  # randn_like
    k = mis_mask.astype(jnp.int32).reshape(B, 1)

    # Fuse the two (D, E) projections into one (D, 2E) matmul.
    w_cat = jnp.concatenate(
        [params["w_route"], params["w_noise"]], axis=1).astype(jnp.float32)
    b_cat = jnp.concatenate(
        [params["b_route"], params["b_noise"]], axis=1).astype(jnp.float32)

    target_bytes, vmem_cap, tc_per_chip = _chip_profile()
    sub = _sublane_rows(x.dtype)

    tB = _pick_block_b(B, tc_per_chip)
    tS = block_s if block_s is not None else _pick_block_s(
        S, tB, D, x.dtype, target_bytes)
    assert S % tS == 0 and B % tB == 0
    chunk = accum_chunk if accum_chunk is not None else _pick_accum_chunk(tS, sub)
    assert tS % chunk == 0
    grid = (B // tB, S // tS)

    # Tight VMEM budget: x double-buffer + single-buffered residents + small
    # double-buffered operands/outputs + accumulator + epilogue margin.
    blk_bytes = tB * tS * D * x.dtype.itemsize
    budget = (2 * blk_bytes                       # x (double-buffered)
              + (D * 2 * E + 2 * E) * 4           # w_cat + b_cat (single-buffered)
              + 2 * (tB * E + tB) * 4             # gauss + k blocks
              + 2 * 2 * tB * E * 4                # two (tB, E) outputs
              + tB * D * 4                        # accumulator scratch
              + (6 << 20))                        # epilogue temps / headroom
    vmem_limit = int(min(max(budget, 16 << 20), vmem_cap))

    kern = functools.partial(
        noisy_topk_router_kernel, inv_s=1.0 / S, num_experts=E,
        accum_chunk=chunk)

    router, noisy = pl.pallas_call(
        kern,
        out_shape=(jax.ShapeDtypeStruct((B, E), jnp.float32),   # router_output
                   jax.ShapeDtypeStruct((B, E), jnp.float32)),  # noisy_logits
        grid=grid,
        in_specs=[
            pl.BlockSpec((tB, tS, D), lambda b, s: (b, s, 0)),       # x blocks
            _single_buffered_spec((D, 2 * E), lambda b, s: (0, 0)),  # fused weight
            _single_buffered_spec((1, 2 * E), lambda b, s: (0, 0)),  # fused bias
            pl.BlockSpec((tB, E), lambda b, s: (b, 0)),              # gauss noise
            pl.BlockSpec((tB, 1), lambda b, s: (b, 0)),              # per-row k
        ],
        out_specs=(pl.BlockSpec((tB, E), lambda b, s: (b, 0)),
                   pl.BlockSpec((tB, E), lambda b, s: (b, 0))),
        scratch_shapes=[pltpu.VMEM((tB, D), jnp.float32)],           # pooled-sum acc
        compiler_params=pltpu.CompilerParams(
            dimension_semantics=("parallel", "arbitrary"),
            vmem_limit_bytes=vmem_limit),
    )(x, w_cat, b_cat, gauss, k)
    return router, noisy


# ----------------------------------------------------------------------------
# pure-JAX reference + self-test
# ----------------------------------------------------------------------------
def _reference(mh_output, mis_mask, params, gauss):
    """Pure-JAX reference matching the PyTorch forward."""
    pooled = jnp.mean(mh_output.astype(jnp.float32), axis=(1, 2))
    logits = jax.nn.softmax(pooled @ params["w_route"] + params["b_route"],
                            axis=-1)
    noise_logits = pooled @ params["w_noise"] + params["b_noise"]
    noise = jax.nn.softmax(gauss * jax.nn.softplus(noise_logits), axis=-1)
    noisy = logits + noise
    order = jnp.argsort(-noisy, axis=-1, stable=True)   # topk, low-index ties
    rank = jnp.argsort(order, axis=-1, stable=True)
    keep = rank < mis_mask.astype(jnp.int32)[:, None]
    sparse = jnp.where(keep, noisy, 0.0)
    return jax.nn.softmax(sparse, axis=-1), noisy


if __name__ == "__main__":
    B, S1, S2, D, E = 2, 4, 4, 32, 8

    key = jax.random.PRNGKey(0)
    k_x, k_params, k_noise = jax.random.split(key, 3)

    mh_output = jax.random.normal(k_x, (B, S1, S2, D), dtype=jnp.float32)
    mis_mask = jnp.array([2, 3], dtype=jnp.int32)   # per-batch top-k counts
    params = init_params(k_params, D, E)

    # Same key/shape/dtype as inside the wrapper -> identical gauss draw.
    gauss = jax.random.normal(k_noise, (B, E), dtype=jnp.float32)
    router_want, noisy_want = _reference(mh_output, mis_mask, params, gauss)

    # Config 1: block_s=8 -> two S grid steps (exercises the gridded
    # accumulate + epilogue).  Config 2: one S step, accum_chunk=8 -> two
    # in-kernel accumulate slices (exercises the chunked upcast path).
    for cfg in (dict(block_s=8), dict(block_s=16, accum_chunk=8)):
        router_output, noisy_logits = noisy_topk_router(
            mh_output, mis_mask, params, k_noise, **cfg)
        jax.block_until_ready((router_output, noisy_logits))

        assert router_output.shape == (B, E)
        assert noisy_logits.shape == (B, E)
        assert bool(jnp.allclose(noisy_logits, noisy_want, atol=2e-3, rtol=2e-3))
        assert bool(jnp.allclose(router_output, router_want, atol=2e-3, rtol=2e-3))
        assert bool(jnp.allclose(jnp.sum(router_output, axis=-1), 1.0, atol=1e-5))

    print("KERNEL_OK")
</pallas_src>

<mosaic_0001>
module attributes {stable_mosaic.version = 11 : i64} {
  func.func @noisy_topk_router_kernel(%arg0: i32, %arg1: i32, %arg2: memref<2x8x32xf32, #tpu.memory_space<vmem>>, %arg3: memref<32x16xf32, #tpu.memory_space<vmem>>, %arg4: memref<1x16xf32, #tpu.memory_space<vmem>>, %arg5: memref<2x8xf32, #tpu.memory_space<vmem>>, %arg6: memref<2x1xi32, #tpu.memory_space<vmem>>, %arg7: memref<2x8xf32, #tpu.memory_space<vmem>>, %arg8: memref<2x8xf32, #tpu.memory_space<vmem>>, %arg9: memref<2x32xf32, #tpu.memory_space<vmem>>) attributes {dimension_semantics = [#tpu.dimension_semantics<parallel>, #tpu.dimension_semantics<arbitrary>], iteration_bounds = array<i64: 1, 2>, scalar_prefetch = 0 : i64, scratch_operands = 1 : i64, tpu.core_type = #tpu.core_type<tc>, window_params = [{transform_indices = @transform_0, window_bounds = array<i64: 2, 8, 32>}, {pipeline_mode = #tpu.pipeline_mode<synchronous>, transform_indices = @transform_1, window_bounds = array<i64: 32, 16>}, {pipeline_mode = #tpu.pipeline_mode<synchronous>, transform_indices = @transform_2, window_bounds = array<i64: 1, 16>}, {transform_indices = @transform_3, window_bounds = array<i64: 2, 8>}, {transform_indices = @transform_4, window_bounds = array<i64: 2, 1>}, {transform_indices = @transform_5, window_bounds = array<i64: 2, 8>}, {transform_indices = @transform_6, window_bounds = array<i64: 2, 8>}]} {
    %c0_i32 = arith.constant 0 : i32
    %0 = arith.cmpi eq, %arg1, %c0_i32 : i32
    %1 = arith.extui %0 : i1 to i32
    %c0_i32_0 = arith.constant 0 : i32
    %2 = arith.cmpi ne, %1, %c0_i32_0 : i32
    scf.if %2 {
      %cst_8 = arith.constant 0.000000e+00 : f32
      %11 = vector.broadcast %cst_8 : f32 to vector<2x32xf32>
      %c0_9 = arith.constant 0 : index
      %c0_10 = arith.constant 0 : index
      %12 = vector.load %arg9[%c0_9, %c0_10] : memref<2x32xf32, #tpu.memory_space<vmem>>, vector<2x32xf32>
      tpu.vector_store %arg9[%c0_9, %c0_10], %11 {strides = array<i32>} : memref<2x32xf32, #tpu.memory_space<vmem>>, vector<2x32xf32>,
    } else {
    }
    %c0 = arith.constant 0 : index
    %c0_1 = arith.constant 0 : index
    %3 = vector.load %arg9[%c0, %c0_1] : memref<2x32xf32, #tpu.memory_space<vmem>>, vector<2x32xf32>
    %c0_2 = arith.constant 0 : index
    %c0_3 = arith.constant 0 : index
    %c0_4 = arith.constant 0 : index
    %4 = vector.load %arg2[%c0_2, %c0_3, %c0_4] : memref<2x8x32xf32, #tpu.memory_space<vmem>>, vector<2x8x32xf32>
    %cst = arith.constant dense<0.000000e+00> : vector<2x32xf32>
    %5 = vector.multi_reduction <add>, %4, %cst [1] : vector<2x8x32xf32> to vector<2x32xf32>
    %6 = arith.addf %3, %5 : vector<2x32xf32>
    %c0_5 = arith.constant 0 : index
    %c0_6 = arith.constant 0 : index
    %7 = vector.load %arg9[%c0_5, %c0_6] : memref<2x32xf32, #tpu.memory_space<vmem>>, vector<2x32xf32>
    tpu.vector_store %arg9[%c0_5, %c0_6], %6 {strides = array<i32>} : memref<2x32xf32, #tpu.memory_space<vmem>>, vector<2x32xf32>,
    %c1_i32 = arith.constant 1 : i32
    %8 = arith.cmpi eq, %arg1, %c1_i32 : i32
    %9 = arith.extui %8 : i1 to i32
    %c0_i32_7 = arith.constant 0 : i32
    %10 = arith.cmpi ne, %9, %c0_i32_7 : i32
    scf.if %10 {
      %c0_8 = arith.constant 0 : index
      %c0_9 = arith.constant 0 : index
      %11 = vector.load %arg9[%c0_8, %c0_9] : memref<2x32xf32, #tpu.memory_space<vmem>>, vector<2x32xf32>
      %cst_10 = arith.constant 6.250000e-02 : f32
      %12 = vector.broadcast %cst_10 : f32 to vector<2x32xf32>
      %13 = arith.mulf %11, %12 : vector<2x32xf32>
      %c0_11 = arith.constant 0 : index
      %c0_12 = arith.constant 0 : index
      %14 = vector.load %arg3[%c0_11, %c0_12] : memref<32x16xf32, #tpu.memory_space<vmem>>, vector<32x16xf32>
      %cst_13 = arith.constant dense<0.000000e+00> : vector<2x16xf32>
      %15 = tpu.matmul %13, %14, %cst_13 {dimension_numbers = #tpu.dot_dimension_numbers<[1], [0], [0], [1], [0, 0, 1, 1], [], []>} : vector<2x32xf32>, vector<32x16xf32>, vector<2x16xf32> -> vector<2x16xf32>
      %c0_14 = arith.constant 0 : index
      %c0_15 = arith.constant 0 : index
      %16 = vector.load %arg4[%c0_14, %c0_15] : memref<1x16xf32, #tpu.memory_space<vmem>>, vector<1x16xf32>
      %17 = vector.broadcast %16 : vector<1x16xf32> to vector<2x16xf32>
      %18 = arith.addf %15, %17 : vector<2x16xf32>
      %19 = vector.extract_strided_slice %18 {offsets = [0, 0], sizes = [2, 8], strides = [1, 1]} : vector<2x16xf32> to vector<2x8xf32>
      %cst_16 = arith.constant dense<0xFF800000> : vector<2xf32>
      %20 = vector.multi_reduction <maximumf>, %19, %cst_16 [1] : vector<2x8xf32> to vector<2xf32>
      %21 = vector.shape_cast %20 : vector<2xf32> to vector<2x1xf32>
      %22 = vector.broadcast %21 : vector<2x1xf32> to vector<2x8xf32>
      %23 = arith.subf %19, %22 : vector<2x8xf32>
      %24 = math.exp %23 : vector<2x8xf32>
      %cst_17 = arith.constant dense<0.000000e+00> : vector<2xf32>
      %25 = vector.multi_reduction <add>, %24, %cst_17 [1] : vector<2x8xf32> to vector<2xf32>
      %26 = vector.shape_cast %25 : vector<2xf32> to vector<2x1xf32>
      %27 = tpu.reciprocal %26 {approx = true} : vector<2x1xf32> -> vector<2x1xf32>
      %28 = vector.broadcast %27 : vector<2x1xf32> to vector<2x8xf32>
      %29 = arith.mulf %24, %28 : vector<2x8xf32>
      %c0_18 = arith.constant 0 : index
      %c0_19 = arith.constant 0 : index
      %30 = vector.load %arg5[%c0_18, %c0_19] : memref<2x8xf32, #tpu.memory_space<vmem>>, vector<2x8xf32>
      %31 = vector.extract_strided_slice %18 {offsets = [0, 8], sizes = [2, 8], strides = [1, 1]} : vector<2x16xf32> to vector<2x8xf32>
      %cst_20 = arith.constant 0.000000e+00 : f32
      %32 = vector.broadcast %cst_20 : f32 to vector<2x8xf32>
      %33 = arith.maximumf %31, %32 : vector<2x8xf32>
      %34 = math.absf %31 : vector<2x8xf32>
      %cst_21 = arith.constant 0.000000e+00 : f32
      %35 = vector.broadcast %cst_21 : f32 to vector<2x8xf32>
      %36 = arith.subf %35, %34 : vector<2x8xf32>
      %37 = math.exp %36 : vector<2x8xf32>
      %38 = math.log1p %37 : vector<2x8xf32>
      %39 = arith.addf %33, %38 : vector<2x8xf32>
      %40 = arith.mulf %30, %39 : vector<2x8xf32>
      %cst_22 = arith.constant dense<0xFF800000> : vector<2xf32>
      %41 = vector.multi_reduction <maximumf>, %40, %cst_22 [1] : vector<2x8xf32> to vector<2xf32>
      %42 = vector.shape_cast %41 : vector<2xf32> to vector<2x1xf32>
      %43 = vector.broadcast %42 : vector<2x1xf32> to vector<2x8xf32>
      %44 = arith.subf %40, %43 : vector<2x8xf32>
      %45 = math.exp %44 : vector<2x8xf32>
      %cst_23 = arith.constant dense<0.000000e+00> : vector<2xf32>
      %46 = vector.multi_reduction <add>, %45, %cst_23 [1] : vector<2x8xf32> to vector<2xf32>
      %47 = vector.shape_cast %46 : vector<2xf32> to vector<2x1xf32>
      %48 = tpu.reciprocal %47 {approx = true} : vector<2x1xf32> -> vector<2x1xf32>
      %49 = vector.broadcast %48 : vector<2x1xf32> to vector<2x8xf32>
      %50 = arith.mulf %45, %49 : vector<2x8xf32>
      %51 = arith.addf %29, %50 : vector<2x8xf32>
      %c0_24 = arith.constant 0 : index
      %c0_25 = arith.constant 0 : index
      %52 = vector.load %arg8[%c0_24, %c0_25] : memref<2x8xf32, #tpu.memory_space<vmem>>, vector<2x8xf32>
      tpu.vector_store %arg8[%c0_24, %c0_25], %51 {strides = array<i32>} : memref<2x8xf32, #tpu.memory_space<vmem>>, vector<2x8xf32>,
      %53 = vector.shape_cast %51 : vector<2x8xf32> to vector<2x8x1xf32>
      %54 = tpu.iota {dimensions = array<i32: 1>} : vector<2x8x1xi32>
      %55 = vector.shape_cast %51 : vector<2x8xf32> to vector<2x1x8xf32>
      %56 = tpu.iota {dimensions = array<i32: 2>} : vector<2x1x8xi32>
      %c0_i32_26 = arith.constant 0 : i32
      %57 = vector.broadcast %c0_i32_26 : i32 to vector<2x1x8xi32>
      %58 = arith.addi %57, %56 : vector<2x1x8xi32>
      %59 = vector.broadcast %53 : vector<2x8x1xf32> to vector<2x8x8xf32>
      %60 = vector.broadcast %55 : vector<2x1x8xf32> to vector<2x8x8xf32>
      %61 = arith.cmpf ogt, %59, %60 : vector<2x8x8xf32>
      %62 = vector.broadcast %53 : vector<2x8x1xf32> to vector<2x8x8xf32>
      %63 = vector.broadcast %55 : vector<2x1x8xf32> to vector<2x8x8xf32>
      %64 = arith.cmpf oeq, %62, %63 : vector<2x8x8xf32>
      %65 = vector.broadcast %54 : vector<2x8x1xi32> to vector<2x8x8xi32>
      %66 = vector.broadcast %58 : vector<2x1x8xi32> to vector<2x8x8xi32>
      %67 = arith.cmpi slt, %65, %66 : vector<2x8x8xi32>
      %68 = arith.andi %64, %67 : vector<2x8x8xi1>
      %69 = arith.ori %61, %68 : vector<2x8x8xi1>
      %70 = arith.extui %69 : vector<2x8x8xi1> to vector<2x8x8xi32>
      %cst_27 = arith.constant dense<0> : vector<2x8xi32>
      %71 = vector.multi_reduction <add>, %70, %cst_27 [1] : vector<2x8x8xi32> to vector<2x8xi32>
      %c0_28 = arith.constant 0 : index
      %c0_29 = arith.constant 0 : index
      %72 = vector.load %arg6[%c0_28, %c0_29] : memref<2x1xi32, #tpu.memory_space<vmem>>, vector<2x1xi32>
      %73 = vector.broadcast %72 : vector<2x1xi32> to vector<2x8xi32>
      %74 = arith.cmpi slt, %71, %73 : vector<2x8xi32>
      %cst_30 = arith.constant 0.000000e+00 : f32
      %75 = vector.broadcast %cst_30 : f32 to vector<2x8xf32>
      %76 = arith.select %74, %51, %75 : vector<2x8xi1>, vector<2x8xf32>
      %cst_31 = arith.constant dense<0xFF800000> : vector<2xf32>
      %77 = vector.multi_reduction <maximumf>, %76, %cst_31 [1] : vector<2x8xf32> to vector<2xf32>
      %78 = vector.shape_cast %77 : vector<2xf32> to vector<2x1xf32>
      %79 = vector.broadcast %78 : vector<2x1xf32> to vector<2x8xf32>
      %80 = arith.subf %76, %79 : vector<2x8xf32>
      %81 = math.exp %80 : vector<2x8xf32>
      %cst_32 = arith.constant dense<0.000000e+00> : vector<2xf32>
      %82 = vector.multi_reduction <add>, %81, %cst_32 [1] : vector<2x8xf32> to vector<2xf32>
      %83 = vector.shape_cast %82 : vector<2xf32> to vector<2x1xf32>
      %84 = vector.broadcast %83 : vector<2x1xf32> to vector<2x8xf32>
      %85 = arith.divf %81, %84 : vector<2x8xf32>
      %c0_33 = arith.constant 0 : index
      %c0_34 = arith.constant 0 : index
      %86 = vector.load %arg7[%c0_33, %c0_34] : memref<2x8xf32, #tpu.memory_space<vmem>>, vector<2x8xf32>
      tpu.vector_store %arg7[%c0_33, %c0_34], %85 {strides = array<i32>} : memref<2x8xf32, #tpu.memory_space<vmem>>, vector<2x8xf32>,
    } else {
    }
    return
  }
  func.func @transform_0(%arg0: i32, %arg1: i32) -> (i32, i32, i32) {
    %c0_i32 = arith.constant 0 : i32
    %c0_i32_0 = arith.constant 0 : i32
    return %arg0, %arg1, %c0_i32 : i32, i32, i32
  }
  func.func @transform_1(%arg0: i32, %arg1: i32) -> (i32, i32) {
    %c0_i32 = arith.constant 0 : i32
    %c0_i32_0 = arith.constant 0 : i32
    %c0_i32_1 = arith.constant 0 : i32
    return %c0_i32, %c0_i32_0 : i32, i32
  }
  func.func @transform_2(%arg0: i32, %arg1: i32) -> (i32, i32) {
    %c0_i32 = arith.constant 0 : i32
    %c0_i32_0 = arith.constant 0 : i32
    %c0_i32_1 = arith.constant 0 : i32
    return %c0_i32, %c0_i32_0 : i32, i32
  }
  func.func @transform_3(%arg0: i32, %arg1: i32) -> (i32, i32) {
    %c0_i32 = arith.constant 0 : i32
    %c0_i32_0 = arith.constant 0 : i32
    return %arg0, %c0_i32 : i32, i32
  }
  func.func @transform_4(%arg0: i32, %arg1: i32) -> (i32, i32) {
    %c0_i32 = arith.constant 0 : i32
    %c0_i32_0 = arith.constant 0 : i32
    return %arg0, %c0_i32 : i32, i32
  }
  func.func @transform_5(%arg0: i32, %arg1: i32) -> (i32, i32) {
    %c0_i32 = arith.constant 0 : i32
    %c0_i32_0 = arith.constant 0 : i32
    return %arg0, %c0_i32 : i32, i32
  }
  func.func @transform_6(%arg0: i32, %arg1: i32) -> (i32, i32) {
    %c0_i32 = arith.constant 0 : i32
    %c0_i32_0 = arith.constant 0 : i32
    return %arg0, %c0_i32 : i32, i32
  }
}

</mosaic_0001>

<bundles_post_ra>
// kernel: tpu_custom_call.1
= control target key start
LH: loop header
LB: loop body
LE: loop exit
PB: predicated region body
PF: predicated region fallthrough
CT: control target
= control target key end

     0   :  { %12 = vsyncpa [#allocation5], 0  ;;  %s1184_s0 = inlined_call_operand.vmem [shape: f32[2,16,32], index: 0, kind: input, shape index: {}]   ;;  %s1185_s1 = inlined_call_operand.vmem [shape: f32[32,16], index: 1, kind: input, shape index: {}]   ;;  %s1186_s2 = inlined_call_operand.vmem [shape: f32[1,16], index: 2, kind: input, shape index: {}]   ;;  %s1187_s3 = inlined_call_operand.vmem [shape: f32[2,8], index: 3, kind: input, shape index: {}]   ;;  %s1188_s4 = inlined_call_operand.vmem [shape: s32[2,1], index: 4, kind: input, shape index: {}]   ;;  %s1189_s5 = inlined_call_operand.hbm [shape: f32[2,8], index: 5, kind: output, shape index: {0}]   ;;  %s1190_s6 = inlined_call_operand.hbm [shape: f32[2,8], index: 6, kind: output, shape index: {1}]  }
   0x1   :  { %13 = vsyncpa [#allocation7], 0  ;;  %s1025_s21 = smov 0   ;;  %s1027_s22 = smov 0  }
   0x2   :  { %s1029_s23 = smov 0   ;;  %s1031_s24 = smov 0  }
   0x3   :  { %s1033_s25 = smov 0  }
   0x4 LB: > { %s757_s26 = sadd.s32 4294967295, %s979_s25   ;;  %s28_s27 = sadd.s32 1, %s975_s24  ;;  %s979_s25 = sphi %s1033_s25, %s19_s25   ;;  %s975_s24 = sphi %s1031_s24, %s1195_s24   ;;  %s971_s23 = sphi %s1029_s23, %s1194_s23   ;;  %s967_s22 = sphi %s1027_s22, %s1193_s22   ;;  %s963_s21 = sphi %s1025_s21, %s1192_s21  }
   0x5   : > { %p29_p0 = scmp.ge.s32.totalorder %s28_s27, 2  ;;  %p47_p1 = scmp.ne.s32.totalorder %s967_s22, %s963_s21 }
   0x6   : > { %p48_p2 = scmp.eq.s32.totalorder %s979_s25, 0  ;;  %s40_s29 = sadd.s32 1, %s967_s22 }
   0x7   : > { %s1197_s27 = smov (%p29_p0, %s28_s27), 0  ;;  %p761_p5 = scmp.ge.s32.totalorder %s979_s25, 2 }
   0x8   : > { %p49_p3 = por %p48_p2, %p47_p1  ;;  %s36_s28 = ssub.s32 %s975_s24, %s1197_s27 }
   0x9   : > { %p38_p4 = scmp.eq.s32.totalorder %s36_s28, 0  ;;  %239 = sbr.rel (%p761_p5) target bundleno = 23 (0x17), region = 32 }
   0xb   : > { %s1061_s30 = scalar_select %p38_p4, %s967_s22, %s40_s29  }
  0x10   : > { %242 = sbr.rel (!%p49_p3) target bundleno = 23 (0x17), region = 36  ;;  %s244_s7 = sand.u32 (%p49_p3), 1, %s967_s22  }
  0x11   : > { %s763_s8 = sshll.u32 (%p49_p3), %s975_s24, 3  ;;  %s762_s9 = sshll.u32 (%p49_p3), %s244_s7, 4 }
  0x12   : > { %s251_s12 = scalar_lea.vmem (%p49_p3), %s1184_s0, %s763_s8  ;;  %s246_s13 = scalar_lea.vmem (%p49_p3), [#allocation3], %s762_s9 }
  0x13   : > { %v281_v0 = vld [vmem:[%s251_s12] sm:$0xff] (%p49_p3)  ;;  %v283_v1 = vld [vmem:[%s251_s12 + $0x10] sm:$0xff] (%p49_p3) }
  0x14   : > { %282 = vst [vmem:[%s246_s13] sm:$0xff] (%p49_p3), %v281_v0  ;;  %284 = vst [vmem:[%s246_s13 + $0x8] sm:$0xff] (%p49_p3), %v283_v1 }
  0x17 PF: > { %p764_p6 = scmp.ge.s32.totalorder %s979_s25, 1  ;;  %p289_p7 = scmp.lt.s32.totalorder %s979_s25, 3 }
  0x19   : > { %p290_p8 = pnand %p764_p6, %p289_p7 }
  0x1a   : > { %s296_s14 = sand.u32 (!%p290_p8), 1, %s963_s21   ;;  %p766_p9 = scmp.ne.s32.totalorder (!%p290_p8), %s971_s23, 0 }
  0x1b   : > { %293 = sbr.rel (%p290_p8) target bundleno = 1268 (0x4f4), region = 74  ;;  %s765_s15 = sshll.u32 (!%p290_p8), %s296_s14, 4 }
  0x1c   : > { %s298_s16 = scalar_lea.vmem (!%p290_p8), [#allocation3], %s765_s15 }
  0x22   : > { %340 = sbr.rel (%p766_p9) target bundleno = 41 (0x29), region = 82  ;;  %vm341_vm0 = vcmask (!%p766_p9), 254976   ;;  %v981_v2 = vmov (!%p766_p9), 0.0  }
  0x23   : > { %342 = vst.msk [vmem:[#allocation2] sm:$0x3] (!%p766_p9), %vm341_vm0, %v981_v2 }
  0x29 PF: > { %v344_v3 = vld [vmem:[%s298_s16] sm:$0xff]  ;;  %v345_v4 = vld [vmem:[%s298_s16 + $0x8] sm:$0xff]  ;;  %vm346_vm1 = vcmask 261120   ;;  %vm363_vm2 = vcmask 1041409   ;;  %vm367_vm3 = vcmask 254976   ;;  %p767_p10 = scmp.ne.s32.totalorder %s971_s23, 1 }
  0x2a   : > { %v347_v5 = vsel %vm346_vm1, %v344_v3, 0.0  ;;  %v354_v6 = vsel %vm346_vm1, %v345_v4, 0.0  ;;  %v343_v17 = vld [vmem:[#allocation2] sm:$0x3]  ;;  %v376_v23 = vld [vmem:[%s1185_s1 + $0x8] sm:$0xff] (!%p767_p10)  ;;  %v377_v24 = vld [vmem:[%s1185_s1 + $0x10] sm:$0xff] (!%p767_p10)  ;;  %v505_v1 = vlaneseq (!%p767_p10) }
  0x2b   : > { %v348_v7 = vrot.slane %v347_v5, 4  ;;  %v355_v8 = vrot.slane %v354_v6, 4  ;;  %v375_v22 = vld [vmem:[%s1185_s1] sm:$0xff] (!%p767_p10)  ;;  %v982_v25 = vmov (!%p767_p10), 0.0|0.0   ;;  %v378_v27 = vld [vmem:[%s1185_s1 + $0x18] sm:$0xff] (!%p767_p10)  ;;  %vm983_vm4 = vmmov (!%p767_p10), 0  }
  0x2c   : > { %792 = vmatprep.subr.bf16.mxu0 (!%p767_p10), %v982_v25  ;;  %v793_v26 = vpack.c.bf16 (!%p767_p10), %v376_v23, %v375_v22  ;;  %v984_v28 = vmov (!%p767_p10), 0.0   ;;  %v796_v29 = vpack.c.bf16 (!%p767_p10), %v378_v27, %v377_v24  ;;  %v768_v32 = vld [vmem:[%s1186_s2] ss:$0 sm:$0xff] (!%p767_p10)  ;;  %s985_s9 = smov (!%p767_p10), 120   ;;  %vm459_vm6 = vcmask (!%p767_p10), 58368  }
  0x2d   : > { %v349_v9 = vadd.f32 %v348_v7, %v347_v5  ;;  %v356_v10 = vadd.f32 %v355_v8, %v354_v6  ;;  %789 = vmatprep.mubr.msk.f32.mxu0 (!%p767_p10), %vm983_vm4, %v984_v28  ;;  %v471_v51 = vld [vmem:[%s1187_s3] sm:$0x3] (!%p767_p10)  ;;  %v986_v2 = vmov (!%p767_p10), 0   ;;  %v506_v3 = vshrl.u32 (!%p767_p10), %v505_v1, 7 }
  0x2e   : > { %794 = vmatpush3.bf16.msra.mxu0 (!%p767_p10), %v793_v26  ;;  %859 = vset.pattern.permute.xlu1 (!%p767_p10), %v986_v2  ;;  %v545_v4 = vand.u32 (!%p767_p10), 127, %v505_v1  ;;  %v987_v7 = vmov (!%p767_p10), 1966171168   ;;  %v582_v26 = vld [vmem:[%s1188_s4] sm:$0x3] (!%p767_p10)  ;;  %vm567_vm10 = vcmask (!%p767_p10), 64512  }
  0x2f   : > { %v350_v11 = vrot.slane %v349_v9, 2  ;;  %v357_v12 = vrot.slane %v356_v10, 2  ;;  %795 = vmatprep.subr.bf16.mxu0 (!%p767_p10), %v982_v25  ;;  %860 = vset.pattern.permute.xlu0 (!%p767_p10), %v986_v2  ;;  %v523_v8 = vunpack.c.l.s4 (!%p767_p10), %v987_v7 }
  0x30   : > { %vm560_vm7 = vcmp.lt.s32.totalorder (!%p767_p10), %v506_v3, %v545_v4 }
  0x31   : > { %v351_v13 = vadd.f32 %v350_v11, %v349_v9  ;;  %v358_v14 = vadd.f32 %v357_v12, %v356_v10  ;;  %v524_v9 = vunpack.c.0.s8 (!%p767_p10), %v523_v8 }
  0x32   : > { %797 = vmatpush3.bf16.msra.mxu0 (!%p767_p10), %v796_v29 }
  0x33   : > { %v352_v15 = vrot.slane %v351_v13, 1  ;;  %v359_v16 = vrot.slane %v358_v14, 1 }
  0x34   : > { %372 = sbr.rel (%p767_p10) target bundleno = 1220 (0x4c4), region = 86 }
  0x35   : > { %v353_v18 = vadd.f32 %v352_v15, %v351_v13  ;;  %v360_v19 = vadd.f32 %v359_v16, %v358_v14  ;;  %v514_v14 = vsub.s32 (!%p767_p10), 1, %v506_v3  ;;  %v527_v15 = vsub.s32 (!%p767_p10), %v524_v9, %v506_v3 }
  0x37   : > { %v364_v20 = vsel %vm363_vm2, %v360_v19, %v353_v18  ;;  %v507_v18 = vsub.s32 (!%p767_p10), 0, %v506_v3 }
  0x38   : > { %v366_v21 = vadd.f32 %v364_v20, %v343_v17 }
  0x3a   : > { %368 = vst.msk [vmem:[#allocation2] sm:$0x3] %vm367_vm3, %v366_v21 }
  0x41   : > { %v373_v30 = vld [vmem:[#allocation2] sm:$0x3] }
  0x42   : > { %v374_v31 = vmul.f32 0.0625, %v373_v30 }
  0x44   : > { %790 = vmatmul.mubr.msk.f32.vlgmr.msra.gmra.mrb[0].mxu0 %vm346_vm1, %v374_v31 }
 0x117   : > { %v455_v33 = vpop.f32.mrb[0].mxu0 }
 0x118   : > { %v456_v34 = vadd.f32 %v768_v32, %v455_v33  ;;  %v791_v35 = vpop.f32.mrb[1].mxu0 }
 0x11a   : > { %v473_v36 = vand.u32 2147483647, %v456_v34  ;;  %v472_v47 = vmax.f32 %v456_v34, 0.0  ;;  %v460_v50 = vsel %vm459_vm6, %v456_v34, -inf }
 0x11c   : > { %v474_v37 = vsub.f32 0.0, %v473_v36 }
 0x11e   : > { %v475_v38 = vmul.f32 1.442695, %v474_v37 }
 0x120   : > { %861 = vpow2.f32 %v475_v38 }
 0x12a   : > { %v862_v39 = vpop.eup %861 }
 0x12b   : > { %v477_v40 = vadd.f32 1.0, %v862_v39  ;;  %v480_v41 = vmul.f32 -0.5, %v862_v39  ;;  %v483_v43 = vand.u32 2147483647, %v862_v39 }
 0x12d   : > { %863 = vlog2.f32 %v477_v40  ;;  %v481_v42 = vadd.f32 1.0, %v480_v41  ;;  %vm484_vm5 = vcmp.lt.f32.partialorder %v483_v43, 0.0004427343 }
 0x12f   : > { %v482_v46 = vmul.f32 %v862_v39, %v481_v42 }
 0x137   : > { %v864_v44 = vpop.eup %863 }
 0x138   : > { %v479_v45 = vmul.f32 0.6931472, %v864_v44 }
 0x13a   : > { %v485_v48 = vsel %vm484_vm5, %v482_v46, %v479_v45 }
 0x13b   : > { %v486_v49 = vadd.f32 %v485_v48, %v472_v47 }
 0x13d   : > { %488 = vrot.lane.b32.xlu0 %v486_v49, %s985_s9 }
 0x15c   : > { %461 = vmax.xlane.f32.xlu0 %v460_v50 }
 0x1af   : > { %v489_v52 = vpop.permute.xlu0 %488 }
 0x1b0   : > { %v491_v53 = vmul.f32 %v489_v52, %v471_v51 }
 0x1b2   : > { %v492_v54 = vsel %vm459_vm6, %v491_v53, -inf }
 0x1b3   : > { %493 = vmax.xlane.f32.xlu1 %v492_v54 }
 0x1e9   : > { %v462_v55 = vpop.xlane.xlu0 %461 }
 0x1ea   : > { %v463_v56 = vsub.f32 %v456_v34, %v462_v55 }
 0x1ec   : > { %v464_v57 = vmul.f32 1.442695, %v463_v56 }
 0x1ee   : > { %865 = vpow2.f32 %v464_v57 }
 0x1f8   : > { %v866_v58 = vpop.eup %865 }
 0x1f9   : > { %v466_v59 = vsel %vm459_vm6, %v866_v58, 0.0 }
 0x1fa   : > { %467 = vadd.xlane.f32.xlu1 %v466_v59 }
 0x240   : > { %v494_v60 = vpop.xlane.xlu1 %493 }
 0x241   : > { %v495_v61 = vsub.f32 %v491_v53, %v494_v60 }
 0x243   : > { %v496_v62 = vmul.f32 1.442695, %v495_v61 }
 0x245   : > { %867 = vpow2.f32 %v496_v62 }
 0x24f   : > { %v868_v63 = vpop.eup %867 }
 0x250   : > { %v498_v0 = vsel %vm459_vm6, %v868_v63, 0.0 }
 0x251   : > { %499 = vadd.xlane.f32.xlu1 %v498_v0 }
 0x287   : > { %v468_v5 = vpop.xlane.xlu1 %467 }
 0x288   : > { %869 = vrcp.f32 %v468_v5 }
 0x292   : > { %v870_v10 = vpop.eup %869 }
 0x293   : > { %v470_v12 = vmul.f32 %v870_v10, %v866_v58 }
 0x2de   : > { %v500_v6 = vpop.xlane.xlu1 %499 }
 0x2df   : > { %871 = vrcp.f32 %v500_v6 }
 0x2e9   : > { %v872_v11 = vpop.eup %871 }
 0x2ea   : > { %v502_v13 = vmul.f32 %v872_v11, %v868_v63 }
 0x2ec   : > { %v503_v16 = vadd.f32 %v502_v13, %v470_v12 }
 0x2ee   : > { %504 = vst.msk [vmem:[#allocation6] sm:$0x3] %vm459_vm6, %v503_v16  ;;  %v515_v17 = vrot.slane %v503_v16, %v514_v14  ;;  %v528_v19 = vrot.slane %v503_v16, %v527_v15  ;;  %v508_v22 = vrot.slane %v503_v16, %v507_v18  ;;  %v589_v47 = vrot.slane %v503_v16, 1 }
 0x2f0   : > { %517 = vbcast.lane.b32.xlu1 %v515_v17, 256  ;;  %v529_v20 = vcombine.high %v528_v19, %v528_v19  ;;  %v536_v21 = vrot.slane %v528_v19, %v527_v15 }
 0x2f2   : > { %v543_v23 = vrot.slane %v529_v20, %v527_v15  ;;  %v549_v24 = vrot.slane %v536_v21, %v507_v18 }
 0x2f4   : > { %510 = vbcast.lane.b32.xlu1 %v508_v22, 256  ;;  %v553_v25 = vrot.slane %v543_v23, %v507_v18 }
 0x2f8   : > { %584 = vperm.xlu1 %859, %v582_v26  }
 0x362   : > { %v518_v27 = vpop.permute.xlu1 %517 }
 0x363   : > { %vm557_vm8 = vcmp.gt.f32.partialorder %v518_v27, %v553_v25  ;;  %vm559_vm9 = vcmp.eq.f32.partialorder %v518_v27, %v553_v25 }
 0x364   : > { %vm562_vm11 = vmand %vm559_vm9, %vm560_vm7 }
 0x365   : > { %vm564_vm12 = vmor %vm557_vm8, %vm562_vm11 }
 0x366   : > { %v566_v28 = vsel %vm564_vm12, 1, %v986_v2  ;;  %v511_v29 = vpop.permute.xlu1 %510 }
 0x367   : > { %v575_v30 = vsel %vm567_vm10, %v566_v28, 0  ;;  %vm556_vm13 = vcmp.gt.f32.partialorder %v511_v29, %v549_v24  ;;  %vm558_vm14 = vcmp.eq.f32.partialorder %v511_v29, %v549_v24 }
 0x368   : > { %v576_v31 = vrot.slane %v575_v30, 4  ;;  %vm561_vm15 = vmand %vm558_vm14, %vm560_vm7 }
 0x369   : > { %vm563_vm0 = vmor %vm556_vm13, %vm561_vm15 }
 0x36a   : > { %v577_v32 = vadd.s32 %v576_v31, %v575_v30  ;;  %v565_v33 = vsel %vm563_vm0, 1, %v986_v2 }
 0x36b   : > { %v568_v34 = vsel %vm567_vm10, %v565_v33, 0 }
 0x36c   : > { %v578_v35 = vrot.slane %v577_v32, 2  ;;  %v569_v36 = vrot.slane %v568_v34, 4 }
 0x36e   : > { %v570_v37 = vadd.s32 %v569_v36, %v568_v34  ;;  %v579_v39 = vadd.s32 %v578_v35, %v577_v32 }
 0x370   : > { %v571_v38 = vrot.slane %v570_v37, 2  ;;  %v580_v42 = vrot.slane %v579_v39, 1 }
 0x372   : > { %v572_v40 = vadd.s32 %v571_v38, %v570_v37  ;;  %v581_v45 = vadd.s32 %v580_v42, %v579_v39 }
 0x374   : > { %v573_v41 = vrot.slane %v572_v40, 1 }
 0x376   : > { %v574_v43 = vadd.s32 %v573_v41, %v572_v40 }
 0x377   : > { %v585_v44 = vpop.permute.xlu1 %584 }
 0x378   : > { %v586_v46 = vrot.slane %v585_v44, 1  ;;  %vm587_vm1 = vcmp.lt.s32.totalorder %v574_v43, %v585_v44 }
 0x379   : > { %v592_v50 = vsel %vm587_vm1, %v503_v16, 0.0 }
 0x37a   : > { %vm588_vm3 = vcmp.lt.s32.totalorder %v581_v45, %v586_v46 }
 0x37b   : > { %v593_v48 = vsel %vm588_vm3, %v589_v47, 0.0 }
 0x37c   : > { %v596_v49 = vrot.slane %v593_v48, 7 }
 0x37e   : > { %v597_v51 = vsel %vm363_vm2, %v596_v49, %v592_v50 }
 0x37f   : > { %v599_v52 = vsel %vm459_vm6, %v597_v51, -inf }
 0x380   : > { %600 = vmax.xlane.f32.xlu0 %v599_v52 }
 0x40d   : > { %v601_v53 = vpop.xlane.xlu0 %600 }
 0x40e   : > { %v603_v54 = vrot.slane %v601_v53, 1  ;;  %v606_v55 = vsub.f32 %v592_v50, %v601_v53 }
 0x410   : > { %v607_v56 = vsub.f32 %v593_v48, %v603_v54  ;;  %v608_v57 = vmul.f32 1.442695, %v606_v55 }
 0x412   : > { %v610_v58 = vmul.f32 1.442695, %v607_v56 }
 0x414   : > { %873 = vpow2.f32 %v610_v58 }
 0x415   : > { %875 = vpow2.f32 %v608_v57 }
 0x41e   : > { %v874_v59 = vpop.eup %873 }
 0x41f   : > { %v614_v60 = vrot.slane %v874_v59, 7  ;;  %v876_v61 = vpop.eup %875 }
 0x421   : > { %v615_v62 = vsel %vm363_vm2, %v614_v60, %v876_v61 }
 0x422   : > { %v617_v63 = vsel %vm459_vm6, %v615_v62, 0.0 }
 0x423   : > { %618 = vadd.xlane.f32.xlu1 %v617_v63 }
 0x4b0   : > { %v619_v0 = vpop.xlane.xlu1 %618 }
 0x4b1   : > { %v621_v1 = vrot.slane %v619_v0, 1  ;;  %877 = vrcp.f32 %v619_v0 }
 0x4b3   : > { %879 = vrcp.f32 %v621_v1 }
 0x4bb   : > { %v878_v2 = vpop.eup %877 }
 0x4bc   : > { %v625_v5 = vmul.f32 %v878_v2, %v876_v61 }
 0x4bd   : > { %v880_v3 = vpop.eup %879 }
 0x4be   : > { %v627_v4 = vmul.f32 %v880_v3, %v874_v59 }
 0x4c0   : > { %v630_v6 = vrot.slane %v627_v4, 7 }
 0x4c2   : > { %v631_v7 = vsel %vm363_vm2, %v630_v6, %v625_v5 }
 0x4c3   : > { %633 = vst.msk [vmem:[#allocation4] sm:$0x3] %vm459_vm6, %v631_v7 }
 0x4c4 PF: > { %p1114_p11 = scmp.eq.s32.totalorder %s757_s26, 1  ;;  %s988_s15 = smov [#allocation4]  }
 0x4c5   : > { %s643_s16 = sshll.u32 %s988_s15, 4  ;;  %s989_s17 = smov [#allocation6]   ;;  %s644_s16 = int_to_ptr.vmem [resolvable:$true] %s643_s16 }
 0x4c6   : > { %s656_s18 = sshll.u32 %s989_s17, 4  ;;  %s881_s19 = scalar_lea.vmem %s644_s16, 32  ;;  %s1118_s18 = int_to_ptr.vmem [resolvable:$true] %s656_s18 }
 0x4c7   : > { %p882_p12 = scmp.ne.s32.totalorder %s644_s16, %s881_s19  ;;  %p888_p1 = scmp.lt.s32.totalorder %s644_s16, %s644_s16 }
 0x4c8   : > { %p889_p2 = scmp.lt.s32.totalorder %s881_s19, %s881_s19 }
 0x4c9   : > { %p883_p13 = pnand %p882_p12, %p1114_p11 }
 0x4ca   : > { %p890_p3 = por %p889_p2, %p888_p1 }
 0x4cb   : > { %p884_p0 = pneg %p883_p13 }
 0x4cd   : > { %p891_p4 = pnand %p890_p3, %p884_p0 }
 0x4cf   : > { %894 = shalt.err (!%p891_p4)
}
 0x4d0   : > { %s895_s21 = scalar_lea.hbm %s1189_s5, 32 }
 0x4d1   : > { %p896_p5 = scmp.ne.s32.totalorder %s1189_s5, %s895_s21  ;;  %p901_p8 = scmp.lt.u32.totalorder %s895_s21, %s1189_s5 }
 0x4d3   : > { %p897_p6 = pnand %p896_p5, %p1114_p11 }
 0x4d5   : > { %p898_p7 = pneg %p897_p6 }
 0x4d7   : > { %p903_p9 = pnand %p901_p8, %p898_p7 }
 0x4d9   : > { %906 = shalt.err (!%p903_p9)
}
 0x4da   : > { %799 = dma.vmem_to_hbm [thread:$0]  (%p1114_p11), %s644_s16, 32, %s1189_s5, [#allocation5]  }
 0x4db   : > { %s907_s10 = scalar_lea.vmem %s1118_s18, 32  ;;  %p914_p0 = scmp.lt.s32.totalorder %s1118_s18, %s1118_s18 }
 0x4dc   : > { %p908_p10 = scmp.ne.s32.totalorder %s1118_s18, %s907_s10  ;;  %p915_p1 = scmp.lt.s32.totalorder %s907_s10, %s907_s10 }
 0x4de   : > { %p909_p12 = pnand %p908_p10, %p1114_p11  ;;  %p916_p2 = por %p915_p1, %p914_p0 }
 0x4e0   : > { %p910_p13 = pneg %p909_p12 }
 0x4e2   : > { %p917_p3 = pnand %p916_p2, %p910_p13 }
 0x4e4   : > { %920 = shalt.err (!%p917_p3)
}
 0x4e5   : > { %s921_s13 = scalar_lea.hbm %s1190_s6, 32 }
 0x4e6   : > { %p922_p4 = scmp.ne.s32.totalorder %s1190_s6, %s921_s13  ;;  %p927_p7 = scmp.lt.u32.totalorder %s921_s13, %s1190_s6 }
 0x4e8   : > { %p923_p5 = pnand %p922_p4, %p1114_p11 }
 0x4ea   : > { %p924_p6 = pneg %p923_p5 }
 0x4ec   : > { %p929_p8 = pnand %p927_p7, %p924_p6 }
 0x4ee   : > { %932 = shalt.err (!%p929_p8)
}
 0x4ef   : > { %801 = dma.vmem_to_hbm [thread:$0]  (%p1114_p11), %s1118_s18, 32, %s1190_s6, [#allocation7]  }
 0x4f0   : > { %954 = dma.done.wait (%p1114_p11), [#allocation5], 32  }
 0x4f1   : > { %956 = vsyncadd (%p1114_p11), [#allocation5], 4294967264 }
 0x4f2   : > { %958 = dma.done.wait (%p1114_p11), [#allocation7], 32  }
 0x4f3   : > { %960 = vsyncadd (%p1114_p11), [#allocation7], 4294967264 }
 0x4f4 PF: > { %s19_s25 = sadd.s32 1, %s979_s25   ;;  %s1192_s21 = smov %s967_s22 }
 0x4f5   : > { %p16_p9 = scmp.ge.s32.totalorder %s19_s25, 4   ;;  %s1193_s22 = smov %s1061_s30 }
 0x4f6   : > { %s1194_s23 = smov %s975_s24  ;;  %s1195_s24 = smov %s1197_s27 }
 0x4f7   :  { %18 = sbr.rel (!%p16_p9) target bundleno = 4 (0x4), region = 134 }
 0x4fe   :  { %673 = vsyncpa [#allocation5], 1 }
 0x4ff   :  { %675 = vsyncpa [#allocation5 + $0x1], 1 }
 0x500   :  { %676 = vsyncpa [#allocation7], 1 }

</bundles_post_ra>
